<compile_context>
chip_gen: v7x
topology: tpu7x:2x2x1
jax: 0.10.0
libtpu: 0.0.40
codegen_flags: <defaults>
</compile_context>

<pallas_src>
import functools

import jax
import jax.numpy as jnp
from jax.experimental import pallas as pl
from jax.experimental.pallas import tpu as pltpu


def _pss_kernel(species_ref, field_ref, *rest, has_scales, has_shifts,
                num_types, compute_dtype):
    """One block: out = shifts[species] + scales[species] * field (in f32).

    species_ref : [rows, W] (lane-packed) or [rows, 1] int32 VMEM block
    field_ref   : [rows, W] (lane-packed) or [rows, F] native-dtype VMEM block
    rest        : (scales_smem?, shifts_smem?, out_ref); tables are 1-D f32 SMEM
    """
    out_ref = rest[-1]
    tables = rest[:-1]
    ti = 0
    scales_ref = None
    shifts_ref = None
    if has_scales:
        scales_ref = tables[ti]
        ti += 1
    if has_shifts:
        shifts_ref = tables[ti]
        ti += 1

    sp = species_ref[...]                               # int32
    x = field_ref[...].astype(compute_dtype)            # native -> default_dtype

    # Unrolled per-type select loop: one compare per type, reused for both
    # tables, scalars read from SMEM.  No [rows, num_types] temporaries and no
    # XLU reductions.  Out-of-range / sentinel ids keep the identity values.
    scale = jnp.ones(sp.shape, compute_dtype) if has_scales else None
    shift = jnp.zeros(sp.shape, compute_dtype) if has_shifts else None
    for t in range(num_types):                          # static trip count
        match = sp == t
        if has_scales:
            scale = jnp.where(match, scales_ref[t], scale)
        if has_shifts:
            shift = jnp.where(match, shifts_ref[t], shift)

    if has_scales:
        x = scale * x          # [rows,1] broadcasts over [rows,F] on wide path
    if has_shifts:
        x = shift + x
    out_ref[...] = x.astype(out_ref.dtype)


def _as_type_table(v, num_types, dtype):
    t = jnp.asarray(v, dtype=dtype).reshape(-1)
    if t.shape[0] == 1 and num_types > 1:
        t = jnp.broadcast_to(t, (num_types,))
    assert t.shape == (num_types,), f"invalid per-type table shape {t.shape}"
    return t


def _pick_block_rows(n_rows, bytes_per_row, requested_rows):
    """Rows per grid block.

    ~4 MiB of HBM traffic per block (>= 2 MiB needed to approach roofline;
    per-grid-step overhead ~0.35 us), >= 2 blocks on large problems so the
    "parallel" atom axis can shard across v7x's two TensorCores, and 8-row
    (sublane) alignment unless a single full block is used.
    """
    if requested_rows is not None:
        t = int(requested_rows)
    else:
        target = 4 << 20
        t = max(1, target // max(1, bytes_per_row))
        if n_rows * bytes_per_row > (2 << 20):          # big enough to split
            t = min(t, -(-n_rows // 2))
    if t >= n_rows:
        return n_rows                                    # full dim: always legal
    t = max(8, (t // 8) * 8)                             # sublane-aligned
    return min(t, n_rows)


def per_species_scale_shift(field, species_idx, scales=None, shifts=None, *,
                            num_types=None, default_dtype=jnp.float32,
                            block_atoms=None, lane_width=512):
    """Pallas equivalent of PerSpeciesScaleShift.forward.

    field:       [N_atoms, F] (or [N_atoms]) per-atom '0e' field, any float dtype.
    species_idx: [N_atoms] (or [N_atoms, 1]) integer atom types in [0, num_types).
    scales/shifts: None, scalar, or [num_types] per-type tables.
    Returns the scaled/shifted field in `default_dtype` (float32 by default).
    """
    has_scales = scales is not None
    has_shifts = shifts is not None
    if not (has_scales or has_shifts):
        return field                                     # module forward: unchanged

    squeeze_out = field.ndim == 1
    field2d = field[:, None] if squeeze_out else field
    n_atoms, n_feat = field2d.shape

    species = jnp.asarray(species_idx).reshape(-1).astype(jnp.int32)
    assert species.shape[0] == n_atoms, "in_field doesnt seem to have correct per-atom shape"

    compute_dtype = jnp.dtype(default_dtype)

    if num_types is None:
        sizes = [jnp.asarray(t).reshape(-1).shape[0]
                 for t in (scales, shifts) if t is not None]
        num_types = max(sizes)
        if num_types == 1:
            raise ValueError(
                "num_types must be given explicitly when scales/shifts are "
                "scalars (torch broadcasts a scalar to every species).")
    num_types = int(num_types)

    tables = []
    if has_scales:
        tables.append(_as_type_table(scales, num_types, compute_dtype))
    if has_shifts:
        tables.append(_as_type_table(shifts, num_types, compute_dtype))

    kernel = functools.partial(_pss_kernel, has_scales=has_scales,
                               has_shifts=has_shifts, num_types=num_types,
                               compute_dtype=compute_dtype)
    table_specs = [pl.BlockSpec(memory_space=pltpu.MemorySpace.SMEM)] * len(tables)
    in_itemsize = jnp.dtype(field2d.dtype).itemsize
    out_itemsize = compute_dtype.itemsize
    cparams = pltpu.CompilerParams(dimension_semantics=("parallel",),
                                   vmem_limit_bytes=32 * 1024 * 1024)

    if n_feat == 1:
        # ---------------- lane-packed path (per-atom energies) ----------------
        W = min(int(lane_width), 128 * pl.cdiv(n_atoms, 128))
        W = max(128, (W // 128) * 128)                   # lane-dense multiple of 128
        n_pad = pl.cdiv(n_atoms, W) * W
        rows = n_pad // W

        field_flat = field2d.reshape(n_atoms)
        if n_pad != n_atoms:
            field_flat = jnp.pad(field_flat, (0, n_pad - n_atoms))
            species_p = jnp.pad(species, (0, n_pad - n_atoms))
        else:
            species_p = species
        field_lp = field_flat.reshape(rows, W)           # bit-free reshapes
        species_lp = species_p.reshape(rows, W)

        bytes_per_row = W * (in_itemsize + out_itemsize + 4)   # in + f32 out + species
        req = None if block_atoms is None else max(1, int(block_atoms) // W)
        block_rows = _pick_block_rows(rows, bytes_per_row, req)
        grid = pl.cdiv(rows, block_rows)

        blk = pl.BlockSpec((block_rows, W), lambda i: (i, 0))
        out = pl.pallas_call(
            kernel,
            out_shape=jax.ShapeDtypeStruct((rows, W), compute_dtype),
            grid_spec=pltpu.PrefetchScalarGridSpec(
                num_scalar_prefetch=0,
                grid=(grid,),
                in_specs=[blk, blk] + table_specs,       # species, field, tables
                out_specs=blk,
            ),
            compiler_params=cparams,
        )(species_lp, field_lp, *tables)

        out = out.reshape(n_pad)[:n_atoms]               # drop padded lanes
        return out if squeeze_out else out[:, None]

    # ---------------- wide-feature path (F >= 2) ----------------
    species2d = species.reshape(n_atoms, 1)
    # (tile, 1) int32 species block is lane-padded to 128 lanes in VMEM:
    # charge 512 B/row so it cannot blow the VMEM / DMA budget.
    bytes_per_row = n_feat * (in_itemsize + out_itemsize) + 512
    block = _pick_block_rows(n_atoms, bytes_per_row, block_atoms)
    grid = pl.cdiv(n_atoms, block)

    out = pl.pallas_call(
        kernel,
        out_shape=jax.ShapeDtypeStruct((n_atoms, n_feat), compute_dtype),
        grid_spec=pltpu.PrefetchScalarGridSpec(
            num_scalar_prefetch=0,
            grid=(grid,),
            in_specs=[pl.BlockSpec((block, 1), lambda i: (i, 0)),        # species
                      pl.BlockSpec((block, n_feat), lambda i: (i, 0))]   # field
                     + table_specs,
            out_specs=pl.BlockSpec((block, n_feat), lambda i: (i, 0)),
        ),
        compiler_params=cparams,
    )(species2d, field2d, *tables)

    return out[:, 0] if squeeze_out else out


if __name__ == "__main__":
    key = jax.random.PRNGKey(0)
    k1, k2, k3, k4, k5 = jax.random.split(key, 5)

    num_types = 4
    scales = jnp.array([0.5, 1.5, 2.0, 0.25], dtype=jnp.float32)
    shifts = jnp.array([-1.0, 0.5, 3.0, 2.0], dtype=jnp.float32)

    def ref(f, sp, sc, sh):
        out = f.astype(jnp.float32)
        if sc is not None:
            out = sc[sp][:, None] * out
        if sh is not None:
            out = sh[sp][:, None] + out
        return out

    # --- F=1 per-atom energy, small ragged N: lane-packed, single block ---
    n1 = 37
    f1 = jax.random.normal(k1, (n1, 1), dtype=jnp.float32)
    s1 = jax.random.randint(k2, (n1,), 0, num_types, dtype=jnp.int32)
    out1 = jax.block_until_ready(per_species_scale_shift(f1, s1, scales, shifts))
    assert out1.dtype == jnp.float32 and out1.shape == (n1, 1)
    assert jnp.allclose(out1, ref(f1, s1, scales, shifts), atol=1e-6, rtol=1e-6)

    # scale-only and shift-only paths (unused table skipped at trace time)
    out_sc = jax.block_until_ready(per_species_scale_shift(f1, s1, scales, None))
    out_sh = jax.block_until_ready(per_species_scale_shift(f1, s1, None, shifts))
    assert jnp.allclose(out_sc, ref(f1, s1, scales, None), atol=1e-6, rtol=1e-6)
    assert jnp.allclose(out_sh, ref(f1, s1, None, shifts), atol=1e-6, rtol=1e-6)

    # --- F=1, multi-block lane-packed grid (padded tail + masked last block) ---
    n2 = 4500
    f2 = jax.random.normal(k3, (n2, 1), dtype=jnp.float32)
    s2 = jax.random.randint(k4, (n2,), 0, num_types, dtype=jnp.int32)
    out2 = jax.block_until_ready(
        per_species_scale_shift(f2, s2, scales, shifts, block_atoms=4096))
    assert jnp.allclose(out2, ref(f2, s2, scales, shifts), atol=1e-6, rtol=1e-6)

    # 1-D field in -> 1-D field out (auto block size)
    out2_1d = jax.block_until_ready(
        per_species_scale_shift(f2[:, 0], s2, scales, shifts))
    assert out2_1d.shape == (n2,)
    assert jnp.allclose(out2_1d, ref(f2, s2, scales, shifts)[:, 0],
                        atol=1e-6, rtol=1e-6)

    # --- bf16 model dtype, F=6: wide path, f32 output (cast inside kernel) ---
    n3 = 300
    f3 = jax.random.normal(k5, (n3, 6), dtype=jnp.float32).astype(jnp.bfloat16)
    s3 = jax.random.randint(k2, (n3,), 0, num_types, dtype=jnp.int32)
    out3 = jax.block_until_ready(per_species_scale_shift(f3, s3, scales, shifts))
    assert out3.dtype == jnp.float32
    assert jnp.allclose(out3, ref(f3, s3, scales, shifts), atol=1e-6, rtol=1e-6)

    # wide path, forced small blocks -> multi-block grid with ragged last block
    out3_tiled = jax.block_until_ready(
        per_species_scale_shift(f3, s3, scales, shifts, block_atoms=64))
    assert jnp.allclose(out3_tiled, ref(f3, s3, scales, shifts),
                        atol=1e-6, rtol=1e-6)

    print("KERNEL_OK")
</pallas_src>

<mosaic_0001>
module attributes {stable_mosaic.version = 11 : i64} {
  func.func @_pss_kernel(%arg0: i32, %arg1: memref<1x128xi32, #tpu.memory_space<vmem>>, %arg2: memref<1x128xf32, #tpu.memory_space<vmem>>, %arg3: memref<4xf32, #tpu.memory_space<smem>>, %arg4: memref<4xf32, #tpu.memory_space<smem>>, %arg5: memref<1x128xf32, #tpu.memory_space<vmem>>) attributes {dimension_semantics = [#tpu.dimension_semantics<parallel>], iteration_bounds = array<i64: 1>, scalar_prefetch = 0 : i64, scratch_operands = 0 : i64, tpu.core_type = #tpu.core_type<tc>, window_params = [{transform_indices = @transform_0, window_bounds = array<i64: 1, 128>}, {transform_indices = @transform_1, window_bounds = array<i64: 1, 128>}, {transform_indices = @transform_2, window_bounds = array<i64: 4>}, {transform_indices = @transform_3, window_bounds = array<i64: 4>}, {transform_indices = @transform_4, window_bounds = array<i64: 1, 128>}]} {
    %c0 = arith.constant 0 : index
    %c0_0 = arith.constant 0 : index
    %0 = vector.load %arg1[%c0, %c0_0] : memref<1x128xi32, #tpu.memory_space<vmem>>, vector<1x128xi32>
    %c0_1 = arith.constant 0 : index
    %c0_2 = arith.constant 0 : index
    %1 = vector.load %arg2[%c0_1, %c0_2] : memref<1x128xf32, #tpu.memory_space<vmem>>, vector<1x128xf32>
    %cst = arith.constant 1.000000e+00 : f32
    %2 = vector.broadcast %cst : f32 to vector<1x128xf32>
    %cst_3 = arith.constant 0.000000e+00 : f32
    %3 = vector.broadcast %cst_3 : f32 to vector<1x128xf32>
    %c0_i32 = arith.constant 0 : i32
    %4 = vector.broadcast %c0_i32 : i32 to vector<1x128xi32>
    %5 = arith.cmpi eq, %0, %4 : vector<1x128xi32>
    %c0_4 = arith.constant 0 : index
    %6 = memref.load %arg3[%c0_4] : memref<4xf32, #tpu.memory_space<smem>>
    %7 = vector.broadcast %6 : f32 to vector<1x128xf32>
    %8 = arith.select %5, %7, %2 : vector<1x128xi1>, vector<1x128xf32>
    %c0_5 = arith.constant 0 : index
    %9 = memref.load %arg4[%c0_5] : memref<4xf32, #tpu.memory_space<smem>>
    %10 = vector.broadcast %9 : f32 to vector<1x128xf32>
    %11 = arith.select %5, %10, %3 : vector<1x128xi1>, vector<1x128xf32>
    %c1_i32 = arith.constant 1 : i32
    %12 = vector.broadcast %c1_i32 : i32 to vector<1x128xi32>
    %13 = arith.cmpi eq, %0, %12 : vector<1x128xi32>
    %c1 = arith.constant 1 : index
    %14 = memref.load %arg3[%c1] : memref<4xf32, #tpu.memory_space<smem>>
    %15 = vector.broadcast %14 : f32 to vector<1x128xf32>
    %16 = arith.select %13, %15, %8 : vector<1x128xi1>, vector<1x128xf32>
    %c1_6 = arith.constant 1 : index
    %17 = memref.load %arg4[%c1_6] : memref<4xf32, #tpu.memory_space<smem>>
    %18 = vector.broadcast %17 : f32 to vector<1x128xf32>
    %19 = arith.select %13, %18, %11 : vector<1x128xi1>, vector<1x128xf32>
    %c2_i32 = arith.constant 2 : i32
    %20 = vector.broadcast %c2_i32 : i32 to vector<1x128xi32>
    %21 = arith.cmpi eq, %0, %20 : vector<1x128xi32>
    %c2 = arith.constant 2 : index
    %22 = memref.load %arg3[%c2] : memref<4xf32, #tpu.memory_space<smem>>
    %23 = vector.broadcast %22 : f32 to vector<1x128xf32>
    %24 = arith.select %21, %23, %16 : vector<1x128xi1>, vector<1x128xf32>
    %c2_7 = arith.constant 2 : index
    %25 = memref.load %arg4[%c2_7] : memref<4xf32, #tpu.memory_space<smem>>
    %26 = vector.broadcast %25 : f32 to vector<1x128xf32>
    %27 = arith.select %21, %26, %19 : vector<1x128xi1>, vector<1x128xf32>
    %c3_i32 = arith.constant 3 : i32
    %28 = vector.broadcast %c3_i32 : i32 to vector<1x128xi32>
    %29 = arith.cmpi eq, %0, %28 : vector<1x128xi32>
    %c3 = arith.constant 3 : index
    %30 = memref.load %arg3[%c3] : memref<4xf32, #tpu.memory_space<smem>>
    %31 = vector.broadcast %30 : f32 to vector<1x128xf32>
    %32 = arith.select %29, %31, %24 : vector<1x128xi1>, vector<1x128xf32>
    %c3_8 = arith.constant 3 : index
    %33 = memref.load %arg4[%c3_8] : memref<4xf32, #tpu.memory_space<smem>>
    %34 = vector.broadcast %33 : f32 to vector<1x128xf32>
    %35 = arith.select %29, %34, %27 : vector<1x128xi1>, vector<1x128xf32>
    %36 = arith.mulf %32, %1 : vector<1x128xf32>
    %37 = arith.addf %35, %36 : vector<1x128xf32>
    %c0_9 = arith.constant 0 : index
    %c0_10 = arith.constant 0 : index
    %38 = vector.load %arg5[%c0_9, %c0_10] : memref<1x128xf32, #tpu.memory_space<vmem>>, vector<1x128xf32>
    tpu.vector_store %arg5[%c0_9, %c0_10], %37 {strides = array<i32>} : memref<1x128xf32, #tpu.memory_space<vmem>>, vector<1x128xf32>,
    return
  }
  func.func @transform_0(%arg0: i32) -> (i32, i32) {
    %c0_i32 = arith.constant 0 : i32
    %c0_i32_0 = arith.constant 0 : i32
    return %arg0, %c0_i32 : i32, i32
  }
  func.func @transform_1(%arg0: i32) -> (i32, i32) {
    %c0_i32 = arith.constant 0 : i32
    %c0_i32_0 = arith.constant 0 : i32
    return %arg0, %c0_i32 : i32, i32
  }
  func.func @transform_2(%arg0: i32) -> i32 {
    %c0_i32 = arith.constant 0 : i32
    %c0_i32_0 = arith.constant 0 : i32
    return %c0_i32 : i32
  }
  func.func @transform_3(%arg0: i32) -> i32 {
    %c0_i32 = arith.constant 0 : i32
    %c0_i32_0 = arith.constant 0 : i32
    return %c0_i32 : i32
  }
  func.func @transform_4(%arg0: i32) -> (i32, i32) {
    %c0_i32 = arith.constant 0 : i32
    %c0_i32_0 = arith.constant 0 : i32
    return %arg0, %c0_i32 : i32, i32
  }
}

</mosaic_0001>

<bundles_post_ra>
// kernel: tpu_custom_call.1
= control target key start
LH: loop header
LB: loop body
LE: loop exit
PB: predicated region body
PF: predicated region fallthrough
CT: control target
= control target key end

     0   :  { %9 = vsyncpa [#allocation3], 0  ;;  %s253_s0 = inlined_call_operand.hbm [shape: s32[1,128], index: 0, kind: input, shape index: {}]   ;;  %s254_s1 = inlined_call_operand.vmem [shape: f32[1,128], index: 1, kind: input, shape index: {}]   ;;  %s255_s2 = inlined_call_operand.vmem [shape: f32[4], index: 2, kind: input, shape index: {}]   ;;  %s256_s3 = inlined_call_operand.vmem [shape: f32[4], index: 3, kind: input, shape index: {}]   ;;  %s257_s4 = inlined_call_operand.hbm [shape: f32[1,128], index: 4, kind: output, shape index: {}]  }
   0x1   :  { %10 = vsyncpa [#allocation5], 0 }
   0x2   :  { %11 = vsyncpa [#allocation8], 0 }
   0x3   :  { %12 = vsyncpa [#allocation4], 0  ;;  %s31_s17 = sshll.u32 %s255_s2, 4  ;;  %s191_s18 = smov [#allocation2]   ;;  %s32_s17 = int_to_ptr.vmem [resolvable:$true] %s31_s17 }
   0x4   :  { %s19_s19 = sshll.u32 %s191_s18, 4  ;;  %s115_s22 = scalar_lea.hbm %s253_s0, 16  ;;  %s20_s19 = int_to_ptr.vmem [resolvable:$true] %s19_s19 }
   0x5   :  { %p116_p0 = scmp.ne.s32.totalorder %s253_s0, %s115_s22  ;;  %p119_p1 = scmp.lt.u32.totalorder %s115_s22, %s253_s0 }
   0x7   :  { %p121_p2 = pnand %p119_p1, %p116_p0 }
   0x9   :  { %124 = shalt.err (!%p121_p2)
}
   0xa   :  { %s125_s27 = scalar_lea.vmem %s20_s19, 16  ;;  %s129_s2 = scalar_lea.vmem %s20_s19, 32 }
   0xb   :  { %p126_p3 = scmp.ne.s32.totalorder %s20_s19, %s125_s27  ;;  %p130_p4 = scmp.lt.s32.totalorder %s20_s19, %s20_s19 }
   0xc   :  { %p131_p5 = scmp.lt.s32.totalorder %s129_s2, %s125_s27 }
   0xe   :  { %p132_p6 = por %p131_p5, %p130_p4 }
  0x10   :  { %p133_p7 = pnand %p132_p6, %p126_p3 }
  0x12   :  { %136 = shalt.err (!%p133_p7)
}
  0x13   :  { %22 = dma.hbm_to_vmem [thread:$0]  %s253_s0, 16, %s20_s19, [#allocation3]  }
  0x14   :  { %s137_s30 = scalar_lea.vmem %s32_s17, 16  ;;  %p142_p9 = scmp.lt.s32.totalorder %s32_s17, %s32_s17 }
  0x15   :  { %p138_p8 = scmp.ne.s32.totalorder %s32_s17, %s137_s30  ;;  %p143_p10 = scmp.lt.s32.totalorder %s137_s30, %s137_s30 }
  0x17   :  { %p144_p11 = por %p143_p10, %p142_p9 }
  0x19   :  { %p145_p12 = pnand %p144_p11, %p138_p8 }
  0x1b   :  { %148 = shalt.err (!%p145_p12)
}
  0x1c   :  { %s192_s5 = smov [#allocation6]   ;;  %s41_s8 = sshll.u32 %s256_s3, 4  ;;  %s42_s8 = int_to_ptr.vmem [resolvable:$true] %s41_s8 }
  0x1d   :  { %34 = dma.vmem_to_smem %s32_s17, 16, %s192_s5, [#allocation5]  }
  0x1e   :  { %s149_s9 = scalar_lea.vmem %s42_s8, 16  ;;  %p154_p0 = scmp.lt.s32.totalorder %s42_s8, %s42_s8 }
  0x1f   :  { %p150_p13 = scmp.ne.s32.totalorder %s42_s8, %s149_s9  ;;  %p155_p1 = scmp.lt.s32.totalorder %s149_s9, %s149_s9 }
  0x21   :  { %p156_p2 = por %p155_p1, %p154_p0 }
  0x23   :  { %p157_p3 = pnand %p156_p2, %p150_p13 }
  0x25   :  { %160 = shalt.err (!%p157_p3)
}
  0x26   :  { %s193_s0 = smov [#allocation7]  }
  0x27   :  { %44 = dma.vmem_to_smem %s42_s8, 16, %s193_s0, [#allocation8]  }
  0x28   :  { %183 = dma.done.wait [#allocation3], 16  }
  0x29   :  { %184 = vsyncadd [#allocation3], 4294967280 }
  0x2a   :  { %185 = dma.done.wait [#allocation5], 16  }
  0x2b   :  { %186 = vsyncadd [#allocation5], 4294967280 }
  0x2c   :  { %187 = dma.done.wait [#allocation8], 16  }
  0x2d   :  { %188 = vsyncadd [#allocation8], 4294967280 }
  0x2e   :  { %54 = sfence }
  0x2f   :  { %s58_s10 = sld [smem:[#allocation6]]  ;;  %v55_v0 = vld [vmem:[#allocation2] sm:$0x1]  ;;  %s105_s11 = sld [smem:[#allocation6 + $0x1]] }
  0x30   :  { %s61_s3 = sld [smem:[#allocation7]]  ;;  %s106_s12 = sld [smem:[#allocation7 + $0x1]]  ;;  %vm57_vm0 = vcmp.eq.s32.totalorder %v55_v0, 0  ;;  %vm64_vm1 = vcmp.eq.s32.totalorder %v55_v0, 1  ;;  %vm71_vm2 = vcmp.eq.s32.totalorder %v55_v0, 2  ;;  %vm78_vm3 = vcmp.eq.s32.totalorder %v55_v0, 3 }
  0x31   :  { %s107_s13 = sld [smem:[#allocation6 + $0x2]]  ;;  %s109_s15 = sld [smem:[#allocation6 + $0x3]]  ;;  %v56_v5 = vld [vmem:[%s254_s1] sm:$0x1] }
  0x32   :  { %s108_s14 = sld [smem:[#allocation7 + $0x2]]  ;;  %s110_s16 = sld [smem:[#allocation7 + $0x3]] }
  0x33   :  { %s194_s19 = smov [#allocation9]  }
  0x34   :  { %s94_s20 = sshll.u32 %s194_s19, 4  ;;  %s95_s20 = int_to_ptr.vmem [resolvable:$true] %s94_s20 }
  0x35   :  { %v59_v1 = vstv %s58_s10  ;;  %v66_v4 = vstv %s105_s11  ;;  %s161_s21 = scalar_lea.vmem %s95_s20, 16  ;;  %s165_s1 = scalar_lea.vmem %s95_s20, 32 }
  0x36   :  { %v60_v2 = vsel %vm57_vm0, %v59_v1, 1.0  ;;  %v62_v3 = vstv %s61_s3  ;;  %v69_v8 = vstv %s106_s12  ;;  %p162_p4 = scmp.ne.s32.totalorder %s95_s20, %s161_s21  ;;  %p166_p5 = scmp.lt.s32.totalorder %s95_s20, %s95_s20 }
  0x37   :  { %v63_v6 = vsel %vm57_vm0, %v62_v3, 0.0  ;;  %v67_v7 = vsel %vm64_vm1, %v66_v4, %v60_v2  ;;  %v73_v9 = vstv %s107_s13  ;;  %v80_v13 = vstv %s109_s15  ;;  %p167_p6 = scmp.lt.s32.totalorder %s165_s1, %s161_s21 }
  0x38   :  { %v70_v10 = vsel %vm64_vm1, %v69_v8, %v63_v6  ;;  %v74_v11 = vsel %vm71_vm2, %v73_v9, %v67_v7  ;;  %v76_v12 = vstv %s108_s14  ;;  %v83_v16 = vstv %s110_s16 }
  0x39   :  { %v77_v14 = vsel %vm71_vm2, %v76_v12, %v70_v10  ;;  %v81_v15 = vsel %vm78_vm3, %v80_v13, %v74_v11  ;;  %p168_p7 = por %p167_p6, %p166_p5 }
  0x3a   :  { %v84_v17 = vsel %vm78_vm3, %v83_v16, %v77_v14  ;;  %v85_v18 = vmul.f32 %v81_v15, %v56_v5 }
  0x3b   :  { %p169_p8 = pnand %p168_p7, %p162_p4 }
  0x3c   :  { %v86_v19 = vadd.f32 %v85_v18, %v84_v17 }
  0x3e   :  { %87 = vst [vmem:[#allocation9] sm:$0x1] %v86_v19 }
  0x3f   :  { %172 = shalt.err (!%p169_p8)
}
  0x40   :  { %s173_s24 = scalar_lea.hbm %s257_s4, 16 }
  0x41   :  { %p174_p9 = scmp.ne.s32.totalorder %s257_s4, %s173_s24  ;;  %p177_p10 = scmp.lt.u32.totalorder %s173_s24, %s257_s4 }
  0x43   :  { %p179_p11 = pnand %p177_p10, %p174_p9 }
  0x45   :  { %182 = shalt.err (!%p179_p11)
}
  0x46   :  { %97 = dma.vmem_to_hbm [thread:$0]  %s95_s20, 16, %s257_s4, [#allocation4]  }
  0x47   :  { %189 = dma.done.wait [#allocation4], 16  }
  0x48   :  { %190 = vsyncadd [#allocation4], 4294967280 }
  0x49   :  { %101 = vsyncpa [#allocation3], 1 }
  0x4a   :  { %102 = vsyncpa [#allocation4], 1 }
  0x4b   :  { %103 = vsyncpa [#allocation5], 1 }
  0x4c   :  { %104 = vsyncpa [#allocation8], 1 }

</bundles_post_ra>
